<compile_context>
chip_gen: v7x
topology: tpu7x:2x2x1
jax: 0.10.0
libtpu: 0.0.40
codegen_flags: <defaults>
</compile_context>

<pallas_src>
import jax
import jax.numpy as jnp
from jax.experimental import pallas as pl
from jax.experimental.pallas import tpu as pltpu


def _round_up(n, m):
    return (n + m - 1) // m * m


# ---------------------------------------------------------------------------
# Kernel: pure matmul + bias + ReLU chain (BN already folded into W/b).
# ---------------------------------------------------------------------------

def _mlp_kernel(x_ref,
                w1_ref, b1_ref,
                w2_ref, b2_ref,
                w3_ref, b3_ref,
                o_ref):
    # x tile arrives in bf16; matmuls run bf16 x bf16 -> f32 accumulate on the
    # MXU.  Bias add and ReLU stay in f32 on the VPU.
    h = jnp.dot(x_ref[...], w1_ref[...], preferred_element_type=jnp.float32)
    h = jnp.maximum(h + b1_ref[...], 0.0)

    h = jnp.dot(h.astype(jnp.bfloat16), w2_ref[...],
                preferred_element_type=jnp.float32)
    h = jnp.maximum(h + b2_ref[...], 0.0)

    out = jnp.dot(h.astype(jnp.bfloat16), w3_ref[...],
                  preferred_element_type=jnp.float32)
    o_ref[...] = (out + b3_ref[...]).astype(o_ref.dtype)


def _vmem_estimate(block_b, fp, hp, tp):
    """Rough VMEM bytes: double-buffered weights/biases + x/out tiles + f32
    intermediates."""
    w_bytes = (fp * hp + hp * hp + hp * tp) * 2 + (hp + hp + tp) * 4
    act_bytes = block_b * (fp * 2 + tp * 4)
    interm = 3 * block_b * hp * 4
    return 2 * w_bytes + 2 * act_bytes + interm


def mlp_forward(x, packed, *, block_b=None):
    """Run the fused kernel.  x: (B, num_features) float32."""
    B, F = x.shape
    assert F == packed["F"]
    Fp, Hp, Tp, T = packed["Fp"], packed["Hp"], packed["Tp"], packed["T"]

    # Pick a batch tile: multiple of 16 (bf16 sublane-friendly), sized so the
    # whole working set comfortably fits scoped VMEM on every generation.
    if block_b is None:
        block_b = 256
        while block_b > 16 and _vmem_estimate(block_b, Fp, Hp, Tp) > (40 << 20):
            block_b //= 2
    block_b = max(16, min(block_b, _round_up(B, 16)))
    Bp = _round_up(B, block_b)

    # Pad batch + features and cast to bf16 (single cast point for the MXU).
    xb = jnp.zeros((Bp, Fp), jnp.bfloat16).at[:B, :F].set(
        x.astype(jnp.bfloat16))

    full2 = lambda shape: pl.BlockSpec(shape, lambda i: (0, 0))
    grid = (Bp // block_b,)

    vmem_limit = min(int(1.25 * _vmem_estimate(block_b, Fp, Hp, Tp)) + (4 << 20),
                     100 << 20)

    out = pl.pallas_call(
        _mlp_kernel,
        out_shape=jax.ShapeDtypeStruct((Bp, Tp), jnp.float32),
        grid_spec=pltpu.PrefetchScalarGridSpec(
            num_scalar_prefetch=0,
            grid=grid,
            in_specs=[
                pl.BlockSpec((block_b, Fp), lambda i: (i, 0)),   # x (batch-tiled)
                full2((Fp, Hp)), full2((1, Hp)),                 # dense1 (BN1 folded)
                full2((Hp, Hp)), full2((1, Hp)),                 # dense2 (BN2 folded)
                full2((Hp, Tp)), full2((1, Tp)),                 # dense3 (BN3 folded)
            ],
            out_specs=pl.BlockSpec((block_b, Tp), lambda i: (i, 0)),
        ),
        compiler_params=pltpu.CompilerParams(
            dimension_semantics=("parallel",),
            vmem_limit_bytes=vmem_limit),
    )(xb,
      packed["w1"], packed["b1"],
      packed["w2"], packed["b2"],
      packed["w3"], packed["b3"])

    return out[:B, :T]


# ---------------------------------------------------------------------------
# Parameter construction + folding (plain-JAX "glue").
# ---------------------------------------------------------------------------

def _weight_norm(v, g):
    """nn.utils.weight_norm with dim=0: W = g * v / ||v|| along rows of v."""
    norm = jnp.sqrt(jnp.sum(v * v, axis=1, keepdims=True))
    return g * v / norm


def _bn_scale_shift(gamma, beta, running_mean, running_var, eps=1e-5):
    """Fold eval-mode BatchNorm1d into per-feature scale/shift."""
    inv_std = 1.0 / jnp.sqrt(running_var + eps)
    scale = gamma * inv_std
    shift = beta - running_mean * scale
    return scale[None, :], shift[None, :]


def make_params(key, num_features, hidden_size, num_targets):
    """Raw (f32, unpadded) params: BN scale/shift + weight-normed linears."""
    ks = jax.random.split(key, 24)

    def linear(kw, kg, kb, fan_in, fan_out):
        bound = 1.0 / jnp.sqrt(jnp.float32(fan_in))
        v = jax.random.uniform(kw, (fan_out, fan_in), jnp.float32, -bound, bound)
        g = jax.random.uniform(kg, (fan_out, 1), jnp.float32, 0.5, 1.5)
        b = jax.random.uniform(kb, (fan_out,), jnp.float32, -bound, bound)
        w_eff = _weight_norm(v, g)               # (out, in)
        return w_eff.T, b[None, :]               # -> (in, out), (1, out)

    def bn(kg, kb, km, kv, n):
        gamma = 1.0 + 0.1 * jax.random.normal(kg, (n,), jnp.float32)
        beta = 0.1 * jax.random.normal(kb, (n,), jnp.float32)
        rmean = 0.1 * jax.random.normal(km, (n,), jnp.float32)
        rvar = jnp.abs(1.0 + 0.1 * jax.random.normal(kv, (n,), jnp.float32))
        return _bn_scale_shift(gamma, beta, rmean, rvar)

    s1, t1 = bn(ks[0], ks[1], ks[2], ks[3], num_features)
    w1, b1 = linear(ks[4], ks[5], ks[6], num_features, hidden_size)
    s2, t2 = bn(ks[7], ks[8], ks[9], ks[10], hidden_size)
    w2, b2 = linear(ks[11], ks[12], ks[13], hidden_size, hidden_size)
    s3, t3 = bn(ks[14], ks[15], ks[16], ks[17], hidden_size)
    w3, b3 = linear(ks[18], ks[19], ks[20], hidden_size, num_targets)

    return dict(s1=s1, t1=t1, w1=w1, b1=b1,
                s2=s2, t2=t2, w2=w2, b2=b2,
                s3=s3, t3=t3, w3=w3, b3=b3)


def fold_and_pack(p):
    """Fold BN into the following linear, pad dims to multiples of 128 (lane
    dense), cast weights to bf16 for the MXU.  Biases stay f32."""
    def fold(s, t, w, b):
        # (x * s + t) @ w + b  ==  x @ (s.T * w) + (t @ w + b)
        return s.reshape(-1, 1) * w, t @ w + b

    w1, b1 = fold(p["s1"], p["t1"], p["w1"], p["b1"])
    w2, b2 = fold(p["s2"], p["t2"], p["w2"], p["b2"])
    w3, b3 = fold(p["s3"], p["t3"], p["w3"], p["b3"])

    F, H = w1.shape
    T = w3.shape[1]
    Fp, Hp, Tp = _round_up(F, 128), _round_up(H, 128), _round_up(T, 128)

    def pad_w(w, r, c):
        out = jnp.zeros((r, c), jnp.float32).at[:w.shape[0], :w.shape[1]].set(w)
        return out.astype(jnp.bfloat16)

    def pad_b(b, c):
        return jnp.zeros((1, c), jnp.float32).at[:, :b.shape[1]].set(b)

    return dict(
        w1=pad_w(w1, Fp, Hp), b1=pad_b(b1, Hp),
        w2=pad_w(w2, Hp, Hp), b2=pad_b(b2, Hp),
        w3=pad_w(w3, Hp, Tp), b3=pad_b(b3, Tp),
        F=F, H=H, T=T, Fp=Fp, Hp=Hp, Tp=Tp)


def reference_forward(x, p):
    """Pure-JAX f32 reference (un-folded, matches the PyTorch eval forward)."""
    h = x * p["s1"] + p["t1"]
    h = jnp.maximum(h @ p["w1"] + p["b1"], 0.0)
    h = h * p["s2"] + p["t2"]
    h = jnp.maximum(h @ p["w2"] + p["b2"], 0.0)
    h = h * p["s3"] + p["t3"]
    return h @ p["w3"] + p["b3"]


if __name__ == "__main__":
    # Small shapes consistent with the module (real model: F~875, H=1024, T=206).
    batch = 64
    num_features = 256
    hidden_size = 128
    num_targets = 206            # not a multiple of 128 -> exercises padding path

    key = jax.random.PRNGKey(0)
    kx, kp = jax.random.split(key)
    x = jax.random.normal(kx, (batch, num_features), jnp.float32)
    params = make_params(kp, num_features, hidden_size, num_targets)
    packed = fold_and_pack(params)

    # block_b=16 -> grid of 4 steps: exercises batch pipelining at small scale.
    out = mlp_forward(x, packed, block_b=16)
    out = jax.block_until_ready(out)

    ref = reference_forward(x, params)
    assert out.shape == (batch, num_targets)
    # bf16 matmul inputs with f32 accumulation: loose-ish tolerances.
    max_abs = float(jnp.max(jnp.abs(out - ref)))
    rel = float(jnp.linalg.norm(out - ref) / (jnp.linalg.norm(ref) + 1e-12))
    assert max_abs < 1.5e-1 and rel < 2e-2, (max_abs, rel)

    print("KERNEL_OK")
</pallas_src>

<mosaic_0001>
module attributes {stable_mosaic.version = 11 : i64} {
  func.func @_mlp_kernel(%arg0: i32, %arg1: memref<16x256xbf16, #tpu.memory_space<vmem>>, %arg2: memref<256x128xbf16, #tpu.memory_space<vmem>>, %arg3: memref<1x128xf32, #tpu.memory_space<vmem>>, %arg4: memref<128x128xbf16, #tpu.memory_space<vmem>>, %arg5: memref<1x128xf32, #tpu.memory_space<vmem>>, %arg6: memref<128x256xbf16, #tpu.memory_space<vmem>>, %arg7: memref<1x256xf32, #tpu.memory_space<vmem>>, %arg8: memref<16x256xf32, #tpu.memory_space<vmem>>) attributes {dimension_semantics = [#tpu.dimension_semantics<parallel>], iteration_bounds = array<i64: 4>, scalar_prefetch = 0 : i64, scratch_operands = 0 : i64, tpu.core_type = #tpu.core_type<tc>, window_params = [{transform_indices = @transform_0, window_bounds = array<i64: 16, 256>}, {pipeline_mode = #tpu.pipeline_mode<synchronous>, transform_indices = @transform_1, window_bounds = array<i64: 256, 128>}, {pipeline_mode = #tpu.pipeline_mode<synchronous>, transform_indices = @transform_2, window_bounds = array<i64: 1, 128>}, {pipeline_mode = #tpu.pipeline_mode<synchronous>, transform_indices = @transform_3, window_bounds = array<i64: 128, 128>}, {pipeline_mode = #tpu.pipeline_mode<synchronous>, transform_indices = @transform_4, window_bounds = array<i64: 1, 128>}, {pipeline_mode = #tpu.pipeline_mode<synchronous>, transform_indices = @transform_5, window_bounds = array<i64: 128, 256>}, {pipeline_mode = #tpu.pipeline_mode<synchronous>, transform_indices = @transform_6, window_bounds = array<i64: 1, 256>}, {transform_indices = @transform_7, window_bounds = array<i64: 16, 256>}]} {
    %c0 = arith.constant 0 : index
    %c0_0 = arith.constant 0 : index
    %0 = vector.load %arg1[%c0, %c0_0] : memref<16x256xbf16, #tpu.memory_space<vmem>>, vector<16x256xbf16>
    %c0_1 = arith.constant 0 : index
    %c0_2 = arith.constant 0 : index
    %1 = vector.load %arg2[%c0_1, %c0_2] : memref<256x128xbf16, #tpu.memory_space<vmem>>, vector<256x128xbf16>
    %cst = arith.constant dense<0.000000e+00> : vector<16x128xf32>
    %2 = tpu.matmul %0, %1, %cst {dimension_numbers = #tpu.dot_dimension_numbers<[1], [0], [0], [1], [0, 0, 1, 1], [], []>} : vector<16x256xbf16>, vector<256x128xbf16>, vector<16x128xf32> -> vector<16x128xf32>
    %c0_3 = arith.constant 0 : index
    %c0_4 = arith.constant 0 : index
    %3 = vector.load %arg3[%c0_3, %c0_4] : memref<1x128xf32, #tpu.memory_space<vmem>>, vector<1x128xf32>
    %4 = vector.broadcast %3 : vector<1x128xf32> to vector<16x128xf32>
    %5 = arith.addf %2, %4 : vector<16x128xf32>
    %cst_5 = arith.constant 0.000000e+00 : f32
    %6 = vector.broadcast %cst_5 : f32 to vector<16x128xf32>
    %7 = arith.maximumf %5, %6 : vector<16x128xf32>
    %8 = arith.truncf %7 : vector<16x128xf32> to vector<16x128xbf16>
    %c0_6 = arith.constant 0 : index
    %c0_7 = arith.constant 0 : index
    %9 = vector.load %arg4[%c0_6, %c0_7] : memref<128x128xbf16, #tpu.memory_space<vmem>>, vector<128x128xbf16>
    %cst_8 = arith.constant dense<0.000000e+00> : vector<16x128xf32>
    %10 = tpu.matmul %8, %9, %cst_8 {dimension_numbers = #tpu.dot_dimension_numbers<[1], [0], [0], [1], [0, 0, 1, 1], [], []>} : vector<16x128xbf16>, vector<128x128xbf16>, vector<16x128xf32> -> vector<16x128xf32>
    %c0_9 = arith.constant 0 : index
    %c0_10 = arith.constant 0 : index
    %11 = vector.load %arg5[%c0_9, %c0_10] : memref<1x128xf32, #tpu.memory_space<vmem>>, vector<1x128xf32>
    %12 = vector.broadcast %11 : vector<1x128xf32> to vector<16x128xf32>
    %13 = arith.addf %10, %12 : vector<16x128xf32>
    %cst_11 = arith.constant 0.000000e+00 : f32
    %14 = vector.broadcast %cst_11 : f32 to vector<16x128xf32>
    %15 = arith.maximumf %13, %14 : vector<16x128xf32>
    %16 = arith.truncf %15 : vector<16x128xf32> to vector<16x128xbf16>
    %c0_12 = arith.constant 0 : index
    %c0_13 = arith.constant 0 : index
    %17 = vector.load %arg6[%c0_12, %c0_13] : memref<128x256xbf16, #tpu.memory_space<vmem>>, vector<128x256xbf16>
    %cst_14 = arith.constant dense<0.000000e+00> : vector<16x256xf32>
    %18 = tpu.matmul %16, %17, %cst_14 {dimension_numbers = #tpu.dot_dimension_numbers<[1], [0], [0], [1], [0, 0, 1, 1], [], []>} : vector<16x128xbf16>, vector<128x256xbf16>, vector<16x256xf32> -> vector<16x256xf32>
    %c0_15 = arith.constant 0 : index
    %c0_16 = arith.constant 0 : index
    %19 = vector.load %arg7[%c0_15, %c0_16] : memref<1x256xf32, #tpu.memory_space<vmem>>, vector<1x256xf32>
    %20 = vector.broadcast %19 : vector<1x256xf32> to vector<16x256xf32>
    %21 = arith.addf %18, %20 : vector<16x256xf32>
    %c0_17 = arith.constant 0 : index
    %c0_18 = arith.constant 0 : index
    %22 = vector.load %arg8[%c0_17, %c0_18] : memref<16x256xf32, #tpu.memory_space<vmem>>, vector<16x256xf32>
    tpu.vector_store %arg8[%c0_17, %c0_18], %21 {strides = array<i32>} : memref<16x256xf32, #tpu.memory_space<vmem>>, vector<16x256xf32>,
    return
  }
  func.func @transform_0(%arg0: i32) -> (i32, i32) {
    %c0_i32 = arith.constant 0 : i32
    %c0_i32_0 = arith.constant 0 : i32
    return %arg0, %c0_i32 : i32, i32
  }
  func.func @transform_1(%arg0: i32) -> (i32, i32) {
    %c0_i32 = arith.constant 0 : i32
    %c0_i32_0 = arith.constant 0 : i32
    %c0_i32_1 = arith.constant 0 : i32
    return %c0_i32, %c0_i32_0 : i32, i32
  }
  func.func @transform_2(%arg0: i32) -> (i32, i32) {
    %c0_i32 = arith.constant 0 : i32
    %c0_i32_0 = arith.constant 0 : i32
    %c0_i32_1 = arith.constant 0 : i32
    return %c0_i32, %c0_i32_0 : i32, i32
  }
  func.func @transform_3(%arg0: i32) -> (i32, i32) {
    %c0_i32 = arith.constant 0 : i32
    %c0_i32_0 = arith.constant 0 : i32
    %c0_i32_1 = arith.constant 0 : i32
    return %c0_i32, %c0_i32_0 : i32, i32
  }
  func.func @transform_4(%arg0: i32) -> (i32, i32) {
    %c0_i32 = arith.constant 0 : i32
    %c0_i32_0 = arith.constant 0 : i32
    %c0_i32_1 = arith.constant 0 : i32
    return %c0_i32, %c0_i32_0 : i32, i32
  }
  func.func @transform_5(%arg0: i32) -> (i32, i32) {
    %c0_i32 = arith.constant 0 : i32
    %c0_i32_0 = arith.constant 0 : i32
    %c0_i32_1 = arith.constant 0 : i32
    return %c0_i32, %c0_i32_0 : i32, i32
  }
  func.func @transform_6(%arg0: i32) -> (i32, i32) {
    %c0_i32 = arith.constant 0 : i32
    %c0_i32_0 = arith.constant 0 : i32
    %c0_i32_1 = arith.constant 0 : i32
    return %c0_i32, %c0_i32_0 : i32, i32
  }
  func.func @transform_7(%arg0: i32) -> (i32, i32) {
    %c0_i32 = arith.constant 0 : i32
    %c0_i32_0 = arith.constant 0 : i32
    return %arg0, %c0_i32 : i32, i32
  }
}

</mosaic_0001>

<bundles_post_ra>
// kernel: tpu_custom_call.1
= control target key start
LH: loop header
LB: loop body
LE: loop exit
PB: predicated region body
PF: predicated region fallthrough
CT: control target
= control target key end

     0   :  { %12 = vsyncpa [#allocation3], 0  ;;  %s1702_s0 = inlined_call_operand.hbm [shape: bf16[64,256], index: 0, kind: input, shape index: {}]   ;;  %s1703_s1 = inlined_call_operand.hbm [shape: bf16[256,128], index: 1, kind: input, shape index: {}]   ;;  %s1704_s2 = inlined_call_operand.vmem [shape: f32[1,128], index: 2, kind: input, shape index: {}]   ;;  %s1705_s3 = inlined_call_operand.hbm [shape: bf16[128,128], index: 3, kind: input, shape index: {}]   ;;  %s1706_s4 = inlined_call_operand.vmem [shape: f32[1,128], index: 4, kind: input, shape index: {}]   ;;  %s1707_s5 = inlined_call_operand.hbm [shape: bf16[128,256], index: 5, kind: input, shape index: {}]   ;;  %s1708_s6 = inlined_call_operand.vmem [shape: f32[1,256], index: 6, kind: input, shape index: {}]   ;;  %s1709_s7 = inlined_call_operand.hbm [shape: f32[64,256], index: 7, kind: output, shape index: {}]  }
   0x1   :  { %14 = vsyncpa [#allocation3 + $0x1], 0 }
   0x2   :  { %15 = vsyncpa [#allocation6], 0 }
   0x3   :  { %16 = vsyncpa [#allocation9], 0 }
   0x4   :  { %17 = vsyncpa [#allocation4], 0 }
   0x5   :  { %19 = vsyncpa [#allocation4 + $0x1], 0  ;;  %s1425_s24 = smov 0   ;;  %s1427_s25 = smov 0  }
   0x6   :  { %s1429_s26 = smov 0   ;;  %s1431_s27 = smov 0  }
   0x7 LB: > { %s1446_s28 = sadd.s32 4294967295, %s1369_s27   ;;  %s923_s29 = sadd.s32 4294967294, %s1369_s27   ;;  %s1369_s27 = sphi %s1431_s27, %s1734_s27   ;;  %s1365_s26 = sphi %s1429_s26, %s1733_s26   ;;  %s1361_s25 = sphi %s1427_s25, %s1732_s25   ;;  %s1357_s24 = sphi %s1425_s24, %s1731_s24  }
   0x8   : > { %p45_p0 = scmp.ne.s32.totalorder %s1361_s25, %s1357_s24  ;;  %p1710_p1 = scmp.eq.s32.totalorder %s1446_s28, 0 }
   0x9   : > { %p201_p3 = scmp.eq.s32.totalorder %s923_s29, 3  ;;  %p924_p5 = scmp.ge.s32.totalorder %s1369_s27, 1 }
   0xa   : > { %p1455_p4 = por %p1710_p1, %p45_p0  ;;  %p208_p7 = scmp.lt.s32.totalorder %s1369_s27, 5 }
   0xb   : > { %p1460_p6 = por %p201_p3, %p45_p0  ;;  %s1371_s10 = smov [#allocation5]  }
   0xc   : > { %s1714_s30 = scalar_select %p1455_p4, 1, 0 }
   0xd   : > { %s1715_s8 = scalar_select %p1460_p6, 1, 0 }
   0xe   : > { %p1465_p8 = pnand %p924_p5, %p208_p7  ;;  %s220_s11 = sshll.u32 %s1371_s10, 4  ;;  %s1469_s11 = int_to_ptr.vmem [resolvable:$true] %s220_s11 }
   0xf   : > { %1716 = sst [smem:[#allocation15_spill]] %s1715_s8  ;;  %s1372_s13 = smov [#allocation7]  }
  0x10   : > { %s1717_s9 = scalar_select %p1465_p8, 1, 0 }
  0x11   : > { %p1060_p9 = pneg %p1465_p8  ;;  %s236_s14 = sshll.u32 %s1372_s13, 4  ;;  %s1479_s14 = int_to_ptr.vmem [resolvable:$true] %s236_s14 }
  0x12   : > { %s1373_s15 = smov [#allocation8]   ;;  %s1181_s19 = scalar_lea.hbm %s1703_s1, 2048 }
  0x13   : > { %p1475_p10 = pnand %p1060_p9, %p1710_p1  ;;  %s1481_s16 = sshll.u32 %s1373_s15, 4  ;;  %s253_s16 = int_to_ptr.vmem [resolvable:$true] %s1481_s16 }
  0x14   : > { %p1182_p11 = scmp.ne.s32.totalorder %s1703_s1, %s1181_s19  ;;  %p1188_p3 = scmp.lt.u32.totalorder %s1181_s19, %s1703_s1 }
  0x15   : > { %p1491_p12 = pneg %p1475_p10 }
  0x17   : > { %p1184_p13 = pnand %p1491_p12, %p1182_p11 }
  0x19   : > { %p1185_p0 = pneg %p1184_p13 }
  0x1b   : > { %p1190_p5 = pnand %p1188_p3, %p1185_p0 }
  0x1d   : > { %1193 = shalt.err (!%p1190_p5)
}
  0x1e   : > { %s1194_s10 = scalar_lea.vmem %s1469_s11, 2048  ;;  %p1202_p2 = scmp.lt.s32.totalorder %s1469_s11, %s1469_s11 }
  0x1f   : > { %p1195_p7 = scmp.ne.s32.totalorder %s1469_s11, %s1194_s10  ;;  %p1203_p6 = scmp.lt.s32.totalorder %s1194_s10, %s1194_s10 }
  0x21   : > { %p1197_p9 = pnand %p1195_p7, %p1491_p12  ;;  %p1204_p11 = por %p1203_p6, %p1202_p2 }
  0x23   : > { %p1198_p1 = pneg %p1197_p9 }
  0x25   : > { %p1205_p13 = pnand %p1204_p11, %p1198_p1 }
  0x27   : > { %1208 = shalt.err (!%p1205_p13)
}
  0x28   : > { %s1374_s13 = smov 64   ;;  %s1375_s15 = smov 4  }
  0x29   : > { %1063 = dma.hbm_to_vmem [thread:$0]  (!%p1475_p10), %s1703_s1, 2048, %s1469_s11, [#allocation6], %s1374_s13, %s1374_s13, %s1375_s15  }
  0x2a   : > { %s1209_s21 = scalar_lea.hbm %s1705_s3, 1024 }
  0x2b   : > { %p1210_p2 = scmp.ne.s32.totalorder %s1705_s3, %s1209_s21  ;;  %p1216_p0 = scmp.lt.u32.totalorder %s1209_s21, %s1705_s3 }
  0x2d   : > { %p1212_p1 = pnand %p1210_p2, %p1491_p12 }
  0x2f   : > { %p1213_p6 = pneg %p1212_p1 }
  0x31   : > { %p1218_p3 = pnand %p1216_p0, %p1213_p6 }
  0x33   : > { %1221 = shalt.err (!%p1218_p3)
}
  0x34   : > { %s1222_s11 = scalar_lea.vmem %s1479_s14, 1024  ;;  %p1230_p11 = scmp.lt.s32.totalorder %s1479_s14, %s1479_s14 }
  0x35   : > { %p1223_p5 = scmp.ne.s32.totalorder %s1479_s14, %s1222_s11  ;;  %p1231_p13 = scmp.lt.s32.totalorder %s1222_s11, %s1222_s11 }
  0x37   : > { %p1225_p7 = pnand %p1223_p5, %p1491_p12  ;;  %p1232_p2 = por %p1231_p13, %p1230_p11 }
  0x39   : > { %p1226_p9 = pneg %p1225_p7 }
  0x3b   : > { %p1233_p1 = pnand %p1232_p2, %p1226_p9 }
  0x3d   : > { %1236 = shalt.err (!%p1233_p1)
}
  0x3e   : > { %1066 = dma.hbm_to_vmem [thread:$0]  (!%p1475_p10), %s1705_s3, 1024, %s1479_s14, [#allocation6], %s1374_s13, %s1374_s13, %s1375_s15  }
  0x3f   : > { %s1237_s20 = scalar_lea.hbm %s1707_s5, 2048 }
  0x40   : > { %p1238_p6 = scmp.ne.s32.totalorder %s1707_s5, %s1237_s20  ;;  %p1244_p5 = scmp.lt.u32.totalorder %s1237_s20, %s1707_s5 }
  0x42   : > { %p1240_p0 = pnand %p1238_p6, %p1491_p12 }
  0x44   : > { %p1241_p3 = pneg %p1240_p0 }
  0x46   : > { %p1246_p7 = pnand %p1244_p5, %p1241_p3 }
  0x48   : > { %1249 = shalt.err (!%p1246_p7)
}
  0x49   : > { %s1250_s11 = scalar_lea.vmem %s253_s16, 2048  ;;  %p1258_p2 = scmp.lt.s32.totalorder %s253_s16, %s253_s16 }
  0x4a   : > { %p1251_p9 = scmp.ne.s32.totalorder %s253_s16, %s1250_s11  ;;  %p1259_p1 = scmp.lt.s32.totalorder %s1250_s11, %s1250_s11 }
  0x4c   : > { %p1253_p11 = pnand %p1251_p9, %p1491_p12  ;;  %p1260_p4 = por %p1259_p1, %p1258_p2 }
  0x4e   : > { %p1254_p13 = pneg %p1253_p11 }
  0x50   : > { %p1261_p8 = pnand %p1260_p4, %p1254_p13 }
  0x52   : > { %1264 = shalt.err (!%p1261_p8)
}
  0x53   : > { %s1376_s14 = smov 128   ;;  %s1377_s22 = smov 8  }
  0x54   : > { %1069 = dma.hbm_to_vmem [thread:$0]  (!%p1475_p10), %s1707_s5, 2048, %s253_s16, [#allocation9], %s1376_s14, %s1376_s14, %s1377_s22  }
  0x55   : > { %s1558_s8 = sadd.s32 1, %s1369_s27   ;;  %s32_s18 = sadd.s32 1, %s1365_s26 }
  0x56   : > { %s29_s17 = ssub.s32 %s1369_s27, %s1558_s8  ;;  %p39_p8 = scmp.ne.s32.totalorder %s1365_s26, %s1361_s25 }
  0x57   : > { %p30_p4 = scmp.eq.s32.totalorder %s29_s17, 0  ;;  %p40_p12 = scmp.eq.s32.totalorder %s1369_s27, 0 }
  0x58   : > { %p1081_p6 = scmp.lt.s32.totalorder %s1369_s27, 4  ;;  %p1720_p3 = scmp.eq.s32.totalorder %s1446_s28, 3 }
  0x59   : > { %s1568_s19 = scalar_select %p30_p4, %s1365_s26, %s32_s18  }
  0x5a   : > { %p41_p0 = por %p40_p12, %p39_p8  ;;  %p1572_p5 = por %p1720_p3, %p39_p8 }
  0x5b   : > { %s269_s20 = sand.u32 1, %s1365_s26   ;;  %s990_s21 = sshll.u32 %s1369_s27, 8 }
  0x5c   : > { %s929_s16 = sshll.u32 %s269_s20, 4  ;;  %s1581_s10 = scalar_lea.hbm %s1702_s0, %s990_s21 }
  0x5d   : > { %s273_s11 = scalar_lea.vmem [#allocation2], %s929_s16  ;;  %p1583_p10 = pnand %p1081_p6, %p41_p0 }
  0x5e   : > { %s281_s13 = sshll.u32 %s273_s11, 4  ;;  %s1589_s17 = scalar_lea.sflag [#allocation3], %s269_s20  ;;  %s1587_s13 = int_to_ptr.vmem [resolvable:$true] %s281_s13 }
  0x5f   : > { %s1265_s18 = scalar_lea.hbm %s1581_s10, 256  ;;  %p1267_p9 = pneg %p1583_p10 }
  0x60   : > { %p1266_p7 = scmp.ne.s32.totalorder %s1581_s10, %s1265_s18  ;;  %s1270_s23 = scalar_lea.hbm %s1702_s0, 1024 }
  0x61   : > { %p1271_p2 = scmp.lt.u32.totalorder %s1581_s10, %s1702_s0  ;;  %p1272_p1 = scmp.lt.u32.totalorder %s1270_s23, %s1265_s18 }
  0x62   : > { %p1268_p11 = pnand %p1267_p9, %p1266_p7  ;;  %p1274_p8 = scmp.lt.u32.totalorder %s1265_s18, %s1581_s10 }
  0x63   : > { %p1273_p4 = por %p1272_p1, %p1271_p2 }
  0x64   : > { %p1269_p13 = pneg %p1268_p11 }
  0x65   : > { %p1275_p12 = por %p1274_p8, %p1273_p4 }
  0x67   : > { %p1276_p6 = pnand %p1275_p12, %p1269_p13 }
  0x69   : > { %1279 = shalt.err (!%p1276_p6)
}
  0x6a   : > { %s1280_s20 = scalar_lea.vmem %s1587_s13, 256  ;;  %s1378_s21 = smov [#allocation2]  }
  0x6b   : > { %p1281_p0 = scmp.ne.s32.totalorder %s1587_s13, %s1280_s20  ;;  %s1285_s16 = sshll.u32 %s1378_s21, 4  ;;  %s1286_s16 = int_to_ptr.vmem [resolvable:$false] %s1285_s16 }
  0x6c   : > { %s1287_s29 = scalar_lea.vmem %s1286_s16, 512  ;;  %p1288_p11 = scmp.lt.s32.totalorder %s1587_s13, %s1286_s16 }
  0x6d   : > { %p1283_p3 = pnand %p1281_p0, %p1267_p9  ;;  %p1289_p2 = scmp.lt.s32.totalorder %s1287_s29, %s1280_s20 }
  0x6f   : > { %p1284_p7 = pneg %p1283_p3  ;;  %p1290_p1 = por %p1289_p2, %p1288_p11 }
  0x71   : > { %p1291_p4 = pnand %p1290_p1, %p1284_p7 }
  0x73   : > { %1294 = shalt.err (!%p1291_p4)
}
  0x74   : > { %1073 = dma.hbm_to_vmem [thread:$0]  (!%p1583_p10), %s1581_s10, 256, %s1587_s13, %s1589_s17, %s1376_s14, %s1376_s14, %s1377_s22  }
  0x75   : > { %p1723_p9 = scmp.ne.s32.totalorder %s1717_s9, 0 }
  0x76   : > { %s1623_s18 = sand.u32 (!%p1723_p9), 1, %s1361_s25   ;;  %p1724_p13 = scmp.ne.s32.totalorder (!%p1723_p9), %s1714_s30, 0 }
  0x77   : > { %293 = sbr.rel (%p1723_p9) target bundleno = 842 (0x34a), region = 48  ;;  %s934_s23 = sshll.u32 (!%p1723_p9), %s1623_s18, 4 }
  0x78   : > { %s296_s11 = scalar_lea.sflag (!%p1723_p9), [#allocation3], %s1623_s18  ;;  %s1627_s20 = scalar_lea.vmem (!%p1723_p9), [#allocation2], %s934_s23 }
  0x7e   : > { %1340 = dma.done.wait (%p1724_p13), %s296_s11, 256  }
  0x7f   : > { %1342 = vsyncadd (%p1724_p13), %s296_s11, 4294967040  ;;  %p1725_p10 = scmp.eq.s32.totalorder %s1446_s28, 0 }
  0x81   : > { %1344 = dma.done.wait (%p1725_p10), [#allocation6], 3072   ;;  %p1726_p8 = pmov %p1725_p10 }
  0x83   : > { %1346 = vsyncadd (%p1726_p8), [#allocation6], 4294964224  ;;  %p1727_p12 = pmov %p1726_p8 }
  0x84   : > { %p1728_p6 = pmov %p1726_p8 }
  0x85   : > { %1348 = dma.done.wait (%p1727_p12), [#allocation9], 2048  }
  0x86   : > { %1350 = vsyncadd (%p1728_p6), [#allocation9], 4294965248  ;;  %v1379_v0 = vmov 0.0   ;;  %v1130_v1 = vld [vmem:[#allocation5 + $0x40] sm:$0xff]   ;;  %v1132_v3 = vld [vmem:[#allocation5 + $0x48] sm:$0xff]   ;;  %vm1380_vm0 = vmmov 0  }
  0x87   : > { %1024 = vmatprep.subr.bf16.mxu1 %v1379_v0  ;;  %v1131_v2 = vld [vmem:[#allocation5] sm:$0xff]   ;;  %993 = vmatprep.subr.bf16.mxu0 %v1130_v1  ;;  %v1133_v4 = vld [vmem:[#allocation5 + $0x8] sm:$0xff]   ;;  %v1134_v5 = vld [vmem:[#allocation5 + $0x50] sm:$0xff]   ;;  %v1381_v55 = vmov 0   ;;  %s938_s15 = sshll.u32 %s1623_s18, 5  ;;  %s992_s16 = sshll.u32 %s1446_s28, 9 }
  0x88   : > { %994 = vmatpush3.bf16.msra.mxu0 %v1131_v2  ;;  %v1135_v6 = vld [vmem:[#allocation5 + $0x10] sm:$0xff]   ;;  %v1136_v7 = vld [vmem:[#allocation5 + $0x58] sm:$0xff]   ;;  %v1138_v9 = vld [vmem:[#allocation5 + $0x60] sm:$0xff]   ;;  %1040 = vmatprep.mubr.msk.bf16.mxu1 %vm1380_vm0, %v1379_v0  ;;  %v669_v2 = vlaneseq  ;;  %s341_s17 = scalar_lea.vmem [#allocation10], %s938_s15  ;;  %s1659_s11 = scalar_lea.hbm %s1709_s7, %s992_s16 }
  0x89   : > { %995 = vmatprep.subr.bf16.mxu0 %v1132_v3  ;;  %v1137_v8 = vld [vmem:[#allocation5 + $0x18] sm:$0xff]   ;;  %v1139_v10 = vld [vmem:[#allocation5 + $0x20] sm:$0xff]   ;;  %v1140_v11 = vld [vmem:[#allocation5 + $0x68] sm:$0xff]   ;;  %s821_s21 = sshll.u32 %s341_s17, 4  ;;  %s807_s28 = scalar_lea.sflag [#allocation4], %s1623_s18  ;;  %s1654_s21 = int_to_ptr.vmem [resolvable:$true] %s821_s21 }
  0x8a   : > { %v1141_v12 = vld [vmem:[#allocation5 + $0x28] sm:$0xff]   ;;  %v1149_v14 = vld [vmem:[#allocation7] sm:$0xff]   ;;  %v1142_v15 = vld [vmem:[#allocation5 + $0x70] sm:$0xff]   ;;  %v670_v3 = vshrl.u32 %v669_v2, 7  ;;  %s1382_s30 = smov [#allocation10]  }
  0x8b   : > { %v1148_v13 = vld [vmem:[%s1627_s20 + $0x4] ss:$8 sps:$4 sm:$0xff]   ;;  %1025 = vmatpush3.bf16.msra.mxu1 %v1149_v14  ;;  %v1146_v22 = vld [vmem:[%s1627_s20] ss:$8 sps:$4 sm:$0xff]   ;;  %s1295_s20 = scalar_lea.vmem %s1654_s21, 512  ;;  %s1299_s9 = sshll.u32 %s1382_s30, 4  ;;  %s1300_s9 = int_to_ptr.vmem [resolvable:$false] %s1299_s9 }
  0x8c   : > { %996 = vmatpush3.bf16.msra.mxu0 %v1133_v4  ;;  %524 = vmatprep.mubr.bf16.mxu0 %v1148_v13  ;;  %v1150_v16 = vld [vmem:[#allocation7 + $0x8] sm:$0xff]   ;;  %v1143_v17 = vld [vmem:[#allocation5 + $0x30] sm:$0xff]   ;;  %v1144_v18 = vld [vmem:[#allocation5 + $0x78] sm:$0xff]   ;;  %v671_v4 = vsub.s32 0, %v670_v3  ;;  %p1296_p0 = scmp.ne.s32.totalorder %s1654_s21, %s1295_s20  ;;  %s1301_s14 = scalar_lea.vmem %s1300_s9, 1024 }
  0x8d   : > { %997 = vmatprep.subr.bf16.mxu0 %v1134_v5  ;;  %1026 = vmatprep.subr.bf16.mxu1 %v1379_v0  ;;  %v1151_v19 = vld [vmem:[#allocation7 + $0x10] sm:$0xff]   ;;  %v1145_v20 = vld [vmem:[#allocation5 + $0x38] sm:$0xff]   ;;  %v1153_v23 = vld [vmem:[#allocation7 + $0x20] sm:$0xff]   ;;  %p1302_p11 = scmp.lt.s32.totalorder %s1654_s21, %s1300_s9  ;;  %p1303_p2 = scmp.lt.s32.totalorder %s1301_s14, %s1295_s20 }
  0x8e   : > { %v1152_v21 = vld [vmem:[#allocation7 + $0x18] sm:$0xff]   ;;  %v1154_v24 = vld [vmem:[#allocation7 + $0x28] sm:$0xff]   ;;  %v1155_v25 = vld [vmem:[#allocation7 + $0x30] sm:$0xff]   ;;  %p1297_p3 = pnand %p1296_p0, %p1572_p5 }
  0x8f   : > { %1027 = vmatpush3.bf16.msra.mxu1 %v1150_v16  ;;  %v1156_v26 = vld [vmem:[#allocation7 + $0x38] sm:$0xff]   ;;  %v1157_v27 = vld [vmem:[#allocation8] ss:$8 sps:$4 sm:$0xff]   ;;  %v1159_v28 = vld [vmem:[#allocation8 + $0x4] ss:$8 sps:$4 sm:$0xff]   ;;  %p1304_p1 = por %p1303_p2, %p1302_p11 }
  0x90   : > { %998 = vmatpush3.bf16.msra.mxu0 %v1135_v6  ;;  %1028 = vmatprep.subr.bf16.mxu1 %v1379_v0  ;;  %v1162_v29 = vld [vmem:[#allocation8 + $0x14] ss:$8 sps:$4 sm:$0xff]   ;;  %v1160_v30 = vld [vmem:[#allocation8 + $0x10] ss:$8 sps:$4 sm:$0xff]   ;;  %v1165_v31 = vld [vmem:[#allocation8 + $0x24] ss:$8 sps:$4 sm:$0xff]   ;;  %p1298_p7 = pneg %p1297_p3 }
  0x91   : > { %999 = vmatprep.subr.bf16.mxu0 %v1136_v7  ;;  %v1163_v32 = vld [vmem:[#allocation8 + $0x20] ss:$8 sps:$4 sm:$0xff]   ;;  %v1168_v33 = vld [vmem:[#allocation8 + $0x34] ss:$8 sps:$4 sm:$0xff]   ;;  %v1166_v34 = vld [vmem:[#allocation8 + $0x30] ss:$8 sps:$4 sm:$0xff]  }
  0x92   : > { %v1171_v35 = vld [vmem:[#allocation8 + $0x44] ss:$8 sps:$4 sm:$0xff]   ;;  %v1169_v36 = vld [vmem:[#allocation8 + $0x40] ss:$8 sps:$4 sm:$0xff]   ;;  %v1174_v37 = vld [vmem:[#allocation8 + $0x54] ss:$8 sps:$4 sm:$0xff]   ;;  %p1305_p4 = pnand %p1304_p1, %p1298_p7 }
  0x93   : > { %1029 = vmatpush3.bf16.msra.mxu1 %v1151_v19  ;;  %v1172_v38 = vld [vmem:[#allocation8 + $0x50] ss:$8 sps:$4 sm:$0xff]   ;;  %v939_v40 = vld [vmem:[%s1704_s2] ss:$0 sm:$0xff]  ;;  %v1177_v51 = vld [vmem:[#allocation8 + $0x64] ss:$8 sps:$4 sm:$0xff]  }
  0x94   : > { %1000 = vmatpush3.bf16.msra.mxu0 %v1137_v8  ;;  %1030 = vmatprep.subr.bf16.mxu1 %v1379_v0  ;;  %v1175_v52 = vld [vmem:[#allocation8 + $0x60] ss:$8 sps:$4 sm:$0xff]   ;;  %v1180_v53 = vld [vmem:[#allocation8 + $0x74] ss:$8 sps:$4 sm:$0xff]   ;;  %v1178_v54 = vld [vmem:[#allocation8 + $0x70] ss:$8 sps:$4 sm:$0xff]  }
  0x95   : > { %1001 = vmatprep.subr.bf16.mxu0 %v1138_v9  ;;  %v958_v56 = vld [vmem:[%s1706_s4] ss:$0 sm:$0xff]  ;;  %v675_v6 = vsub.s32 1, %v670_v3 }
  0x96   : > { %v667_v5 = vld [vmem:[%s1708_s6] sm:$0x3] }
  0x97   : > { %1031 = vmatpush3.bf16.msra.mxu1 %v1152_v21  ;;  %v672_v7 = vrot.slane %v667_v5, %v671_v4  ;;  %v676_v8 = vrot.slane %v667_v5, %v675_v6 }
  0x98   : > { %1002 = vmatpush3.bf16.msra.mxu0 %v1139_v10  ;;  %1032 = vmatprep.subr.bf16.mxu1 %v1379_v0 }
  0x99   : > { %1003 = vmatprep.subr.bf16.mxu0 %v1140_v11 }
  0x9b   : > { %1033 = vmatpush3.bf16.msra.mxu1 %v1153_v23 }
  0x9c   : > { %1004 = vmatpush3.bf16.msra.mxu0 %v1141_v12  ;;  %1034 = vmatprep.subr.bf16.mxu1 %v1379_v0 }
  0x9d   : > { %1005 = vmatprep.subr.bf16.mxu0 %v1142_v15 }
  0x9f   : > { %1035 = vmatpush3.bf16.msra.mxu1 %v1154_v24 }
  0xa0   : > { %1006 = vmatpush3.bf16.msra.mxu0 %v1143_v17  ;;  %1036 = vmatprep.subr.bf16.mxu1 %v1379_v0 }
  0xa1   : > { %1007 = vmatprep.subr.bf16.mxu0 %v1144_v18 }
  0xa3   : > { %1037 = vmatpush3.bf16.msra.mxu1 %v1155_v25 }
  0xa4   : > { %1008 = vmatpush3.bf16.msra.mxu0 %v1145_v20  ;;  %1038 = vmatprep.subr.bf16.mxu1 %v1379_v0 }
  0xa5   : > { %759 = vmatprep.subr.bf16.mxu0 %v1159_v28 }
  0xa7   : > { %525 = vmatmul.mubr.bf16.vlgmr.msra.gmra.mrb[0].mxu0 %v1146_v22  ;;  %1039 = vmatpush3.bf16.msra.mxu1 %v1156_v26 }
  0xa8   : > { %760 = vmatpush1.bf16.msra.mxu0 %v1157_v27  ;;  %791 = vmatprep.mubr.bf16.mxu0 %v1381_v55 }
  0xa9   : > { %761 = vmatprep.subr.bf16.mxu0 %v1162_v29 }
  0xac   : > { %762 = vmatpush1.bf16.msra.mxu0 %v1160_v30 }
  0xad   : > { %763 = vmatprep.subr.bf16.mxu0 %v1165_v31 }
  0xb0   : > { %764 = vmatpush1.bf16.msra.mxu0 %v1163_v32 }
  0xb1   : > { %765 = vmatprep.subr.bf16.mxu0 %v1168_v33 }
  0xb4   : > { %766 = vmatpush1.bf16.msra.mxu0 %v1166_v34 }
  0xb5   : > { %767 = vmatprep.subr.bf16.mxu0 %v1171_v35 }
  0xb8   : > { %768 = vmatpush1.bf16.msra.mxu0 %v1169_v36 }
  0xb9   : > { %769 = vmatprep.subr.bf16.mxu0 %v1174_v37 }
  0xbc   : > { %770 = vmatpush1.bf16.msra.mxu0 %v1172_v38 }
  0xbd   : > { %771 = vmatprep.subr.bf16.mxu0 %v1177_v51 }
  0xc0   : > { %772 = vmatpush1.bf16.msra.mxu0 %v1175_v52 }
  0xc1   : > { %773 = vmatprep.subr.bf16.mxu0 %v1180_v53 }
  0xc4   : > { %774 = vmatpush1.bf16.msra.mxu0 %v1178_v54 }
 0x17a   : > { %v1009_v39 = vpop.f32.mrb[0].mxu0 }
 0x17b   : > { %v1010_v41 = vpop.f32.mrb[1].mxu0 }
 0x17c   : > { %v1011_v42 = vadd.f32 %v1010_v41, %v1009_v39  ;;  %v1012_v43 = vpop.f32.mrb[2].mxu0 }
 0x17d   : > { %v1013_v44 = vpop.f32.mrb[3].mxu0 }
 0x17e   : > { %v527_v45 = vadd.f32 %v1011_v42, %v939_v40  ;;  %v1014_v46 = vadd.f32 %v1013_v44, %v1012_v43 }
 0x180   : > { %v530_v47 = vadd.f32 %v1014_v46, %v939_v40  ;;  %v533_v48 = vmax.f32 %v527_v45, 0.0 }
 0x182   : > { %v534_v49 = vmax.f32 %v530_v47, 0.0 }
 0x184   : > { %v535_v50 = vpack.c.bf16 %v534_v49, %v533_v48 }
 0x186   : > { %1041 = vmatmul.mubr.bf16.vlgmr.msra.gmra.mrb[0].mxu1 %v535_v50 }
 0x259   : > { %v641_v57 = vpop.f32.mrb[0].mxu1 }
 0x25a   : > { %v642_v58 = vadd.f32 %v958_v56, %v641_v57  ;;  %v1042_v59 = vpop.f32.mrb[1].mxu1 }
 0x25b   : > { %v644_v60 = vpop.f32.mrb[2].mxu1 }
 0x25c   : > { %v645_v61 = vadd.f32 %v958_v56, %v644_v60  ;;  %v1043_v62 = vpop.f32.mrb[3].mxu1  ;;  %v648_v63 = vmax.f32 %v642_v58, 0.0 }
 0x25e   : > { %v649_v0 = vmax.f32 %v645_v61, 0.0 }
 0x260   : > { %v650_v1 = vpack.c.bf16 %v649_v0, %v648_v63 }
 0x262   : > { %792 = vmatmul.mubr.bf16.vlgmr.msra.gmra.mrb[4].mxu0 %v650_v1 }
 0x335   : > { %v793_v9 = vpop.f32.mrb[4].mxu0 }
 0x336   : > { %v794_v10 = vadd.f32 %v793_v9, %v672_v7  ;;  %v795_v11 = vpop.f32.mrb[5].mxu0 }
 0x337   : > { %v796_v12 = vadd.f32 %v795_v11, %v676_v8  ;;  %v797_v13 = vpop.f32.mrb[6].mxu0 }
 0x338   : > { %802 = vst [vmem:[%s341_s17] sm:$0xff] %v794_v10  ;;  %v798_v14 = vadd.f32 %v797_v13, %v672_v7  ;;  %v799_v15 = vpop.f32.mrb[7].mxu0 }
 0x339   : > { %803 = vst [vmem:[%s341_s17 + $0x8] sm:$0xff] %v796_v12  ;;  %v800_v16 = vadd.f32 %v799_v15, %v676_v8 }
 0x33a   : > { %804 = vst [vmem:[%s341_s17 + $0x10] sm:$0xff] %v798_v14 }
 0x33b   : > { %805 = vst [vmem:[%s341_s17 + $0x18] sm:$0xff] %v800_v16 }
 0x33c   : > { %1308 = shalt.err (!%p1305_p4)
}
 0x33d   : > { %s1309_s22 = scalar_lea.hbm %s1659_s11, 512  ;;  %s1313_s15 = scalar_lea.hbm %s1709_s7, 2048 }
 0x33e   : > { %p1310_p9 = scmp.ne.s32.totalorder %s1659_s11, %s1309_s22  ;;  %p1314_p8 = scmp.lt.u32.totalorder %s1659_s11, %s1709_s7 }
 0x33f   : > { %p1315_p12 = scmp.lt.u32.totalorder %s1313_s15, %s1309_s22  ;;  %p1317_p0 = scmp.lt.u32.totalorder %s1309_s22, %s1659_s11 }
 0x340   : > { %p1311_p13 = pnand %p1310_p9, %p1572_p5 }
 0x341   : > { %p1316_p6 = por %p1315_p12, %p1314_p8 }
 0x342   : > { %p1312_p10 = pneg %p1311_p13 }
 0x343   : > { %p1318_p3 = por %p1317_p0, %p1316_p6 }
 0x345   : > { %p1319_p7 = pnand %p1318_p3, %p1312_p10 }
 0x347   : > { %1322 = shalt.err (!%p1319_p7)
}
 0x348   : > { %s1383_s29 = smov 256   ;;  %s1384_s23 = smov 16  }
 0x349   : > { %1058 = dma.vmem_to_hbm [thread:$0]  (%p1572_p5), %s1654_s21, 512, %s1659_s11, %s807_s28, %s1383_s29, %s1383_s29, %s1384_s23  }
 0x34a PF: > { %s1729_s20 = sld [smem:[#allocation15_spill]]  ;;  %p1085_p11 = scmp.ge.s32.totalorder %s1369_s27, 2 }
 0x34b   : > { %s836_s30 = sand.u32 1, %s1357_s24  }
 0x34c   : > { %s837_s9 = scalar_lea.sflag [#allocation4], %s836_s30 }
 0x350   : > { %p1730_p2 = scmp.ne.s32.totalorder %s1729_s20, 0 }
 0x352   : > { %p1075_p1 = pnand %p1085_p11, %p1730_p2 }
 0x354   : > { %1352 = dma.done.wait (!%p1075_p1), %s837_s9, 512  }
 0x355   : > { %1354 = vsyncadd (!%p1075_p1), %s837_s9, 4294966784  ;;  %p22_p4 = scmp.ge.s32.totalorder %s1558_s8, 6   ;;  %s1731_s24 = smov %s1361_s25 }
 0x356   : > { %s1732_s25 = smov %s1365_s26  ;;  %s1733_s26 = smov %s1568_s19 }
 0x357   : > { %s1734_s27 = smov %s1558_s8  ;;  %24 = sbr.rel (!%p22_p4) target bundleno = 7 (0x7), region = 105 }
 0x35e   :  { %842 = vsyncpa [#allocation3], 1 }
 0x35f   :  { %844 = vsyncpa [#allocation3 + $0x1], 1 }
 0x360   :  { %845 = vsyncpa [#allocation6], 1 }
 0x361   :  { %846 = vsyncpa [#allocation9], 1 }
 0x362   :  { %847 = vsyncpa [#allocation4], 1 }
 0x363   :  { %849 = vsyncpa [#allocation4 + $0x1], 1 }

</bundles_post_ra>
